<compile_context>
chip_gen: v5e
topology: v5e:2x2
jax: 0.10.0
libtpu: 0.0.40
codegen_flags: <defaults>
</compile_context>

<pallas_src>
import jax
import jax.numpy as jnp
from jax.experimental import pallas as pl
from jax.experimental.pallas import tpu as pltpu


def _round_up(v, m):
    return ((v + m - 1) // m) * m


# ----------------------------------------------------------------------------
# Kernel: one (batch-tile, block) GRU step.  Shape-generic.
# ----------------------------------------------------------------------------
def _block_gru_kernel(x_ref, h_ref,
                      wr_ref, wz_ref, wn_ref,     # ih gate weights (gin_x, gh)
                      ur_ref, uz_ref, un_ref,     # hh gate weights (gh, gh)
                      br_ref, bz_ref, bin_ref, bhn_ref,   # biases (1, gh) f32
                      o_ref):
    x = x_ref[...]                       # (bm, gin_x)
    h = h_ref[...]                       # (bm, gh)
    xm = x.astype(wr_ref.dtype)          # bf16 MXU operands
    hm = h.astype(ur_ref.dtype)

    def mm(a, w_ref):
        return jnp.dot(a, w_ref[...], preferred_element_type=jnp.float32)

    # Gate math in f32 (biases already combined for r/z in the wrapper).
    r = jax.nn.sigmoid(mm(xm, wr_ref) + mm(hm, ur_ref) + br_ref[...])
    z = jax.nn.sigmoid(mm(xm, wz_ref) + mm(hm, uz_ref) + bz_ref[...])
    hn = mm(hm, un_ref) + bhn_ref[...]
    n = jnp.tanh(mm(xm, wn_ref) + bin_ref[...] + r * hn)

    hf = h.astype(jnp.float32)
    o_ref[...] = ((1.0 - z) * n + z * hf).astype(o_ref.dtype)


# ----------------------------------------------------------------------------
# Module wrapper
# ----------------------------------------------------------------------------
class BlockGRU:
    """GRU cell whose weight matrices are masked to a block-diagonal structure."""

    def __init__(self, ninp, nhid, k, *, key=None, dtype=jnp.float32,
                 mxu_dtype=jnp.bfloat16):
        assert ninp % k == 0
        assert nhid % k == 0
        if key is None:
            key = jax.random.PRNGKey(0)
        self.k = k
        self.ninp = ninp
        self.nhid = nhid
        self.ginp = ninp // k
        self.ghid = nhid // k
        self.mxu_dtype = mxu_dtype

        # torch.nn.GRUCell init: U(-1/sqrt(nhid), 1/sqrt(nhid))
        bound = 1.0 / (nhid ** 0.5)
        kwih, kwhh, kbih, kbhh = jax.random.split(key, 4)
        self.weight_ih = jax.random.uniform(kwih, (3 * nhid, ninp), dtype, -bound, bound)
        self.weight_hh = jax.random.uniform(kwhh, (3 * nhid, nhid), dtype, -bound, bound)
        self.bias_ih = jax.random.uniform(kbih, (3 * nhid,), dtype, -bound, bound)
        self.bias_hh = jax.random.uniform(kbhh, (3 * nhid,), dtype, -bound, bound)

        # Block-diagonal masks (repeat_interleave == jnp.repeat, .repeat(3,1) == tile).
        eye = jnp.eye(k, dtype=dtype)
        mhx = jnp.repeat(jnp.repeat(eye, self.ghid, axis=0), self.ginp, axis=1)
        mhh = jnp.repeat(jnp.repeat(eye, self.ghid, axis=0), self.ghid, axis=1)
        self.mask_hx = jnp.tile(mhx, (3, 1))   # (3*nhid, ninp)
        self.mask_hh = jnp.tile(mhh, (3, 1))   # (3*nhid, nhid)

        self.blockify_params()   # build the cached masked / packed weights

    # -- cached functional equivalent of the in-place torch masking ----------
    def blockify_params(self):
        k, nhid = self.k, self.nhid
        ghid, ginp = self.ghid, self.ginp
        w_ih = (self.weight_ih * self.mask_hx).astype(jnp.float32)
        w_hh = (self.weight_hh * self.mask_hh).astype(jnp.float32)
        b_ih = self.bias_ih.astype(jnp.float32)
        b_hh = self.bias_hh.astype(jnp.float32)

        # Block-sparse path only when the per-block dims are MXU/lane friendly.
        use_block = (k > 1) and (ghid % 128 == 0) and (ginp % 128 == 0)
        if use_block:
            kb, gx, gh = k, ginp, ghid
        else:
            kb, gx = 1, self.ninp
            gh = _round_up(nhid, 128)          # lane-dense output width

        def gate(w, g):
            return w[g * nhid:(g + 1) * nhid]

        wih = [gate(w_ih, g) for g in range(3)]   # each (nhid, ninp)
        whh = [gate(w_hh, g) for g in range(3)]   # each (nhid, nhid)
        bih = [gate(b_ih, g) for g in range(3)]   # each (nhid,)
        bhh = [gate(b_hh, g) for g in range(3)]

        if use_block:
            idx = jnp.arange(k)

            def blk_w(w, gin):                     # (k*ghid, k*gin) -> (k, gin, ghid)
                b = w.reshape(k, ghid, k, gin)[idx, :, idx, :]   # (k, ghid, gin)
                return jnp.transpose(b, (0, 2, 1))

            def blk_b(b):
                return b.reshape(k, 1, ghid)

            W = [blk_w(wih[0], ginp), blk_w(wih[1], ginp), blk_w(wih[2], ginp),
                 blk_w(whh[0], ghid), blk_w(whh[1], ghid), blk_w(whh[2], ghid)]
            Bs = [blk_b(bih[0] + bhh[0]), blk_b(bih[1] + bhh[1]),
                  blk_b(bih[2]), blk_b(bhh[2])]
        else:
            col_pad = gh - nhid

            def dense_w(w, row_pad):               # (nhid, in) -> (1, in+row_pad, gh)
                wt = jnp.pad(w.T, ((0, row_pad), (0, col_pad)))
                return wt[None]

            def dense_b(b):
                return jnp.pad(b, (0, col_pad)).reshape(1, 1, gh)

            W = [dense_w(wih[0], 0), dense_w(wih[1], 0), dense_w(wih[2], 0),
                 dense_w(whh[0], col_pad), dense_w(whh[1], col_pad), dense_w(whh[2], col_pad)]
            Bs = [dense_b(bih[0] + bhh[0]), dense_b(bih[1] + bhh[1]),
                  dense_b(bih[2]), dense_b(bhh[2])]

        self._W = tuple(w.astype(self.mxu_dtype) for w in W)   # bf16, cached
        self._Bvec = tuple(Bs)                                  # f32, cached
        self._kb, self._gx, self._gh = kb, gx, gh
        # Single-buffer the resident weights only when they are constant
        # across the whole grid (dense path).
        self._single_buf = (kb == 1)

    # -- batch tile size ------------------------------------------------------
    @staticmethod
    def _pick_bm(B):
        if B >= 512:
            return 256
        if B >= 16:
            return min(256, _round_up((B + 1) // 2, 8))   # >=2 grid steps
        return _round_up(max(B, 1), 8)

    @staticmethod
    def _vmem_limit(work_bytes):
        try:
            cap = int(pltpu.get_tpu_info().vmem_capacity_bytes)
        except Exception:
            cap = 64 << 20
        want = int(work_bytes * 1.3) + (8 << 20)
        return int(min(max(want, 32 << 20), int(cap * 0.9)))

    # -- pallas_call builder ---------------------------------------------------
    def _pallas_forward(self, x, h, grid, bm, single_buf):
        kb, gx, gh = self._kb, self._gx, self._gh
        B_pad = x.shape[0]

        def stream_map(j, i):   # x / h / out blocks
            return (i, j)

        def weight_map(j, i):   # per-block resident weights / biases
            return (j, 0, 0)

        wkw = dict(pipeline_mode=pl.Buffered(1)) if single_buf else {}
        w_ih_spec = pl.BlockSpec((None, gx, gh), weight_map, **wkw)
        w_hh_spec = pl.BlockSpec((None, gh, gh), weight_map, **wkw)
        b_spec = pl.BlockSpec((None, 1, gh), weight_map, **wkw)

        in_specs = [
            pl.BlockSpec((bm, gx), stream_map),     # x tile
            pl.BlockSpec((bm, gh), stream_map),     # h tile
            w_ih_spec, w_ih_spec, w_ih_spec,        # W_ih^T per gate
            w_hh_spec, w_hh_spec, w_hh_spec,        # W_hh^T per gate
            b_spec, b_spec, b_spec, b_spec,         # b_r, b_z, b_in, b_hn
        ]
        out_specs = pl.BlockSpec((bm, gh), stream_map)

        # VMEM working set: weights (x buffer count) + streamed tiles + temps.
        wbytes = jnp.dtype(self.mxu_dtype).itemsize
        wbuf = 1 if single_buf else 2
        work = (3 * gx * gh + 3 * gh * gh) * wbytes * wbuf
        work += 4 * gh * 4 * wbuf
        work += 2 * bm * (gx + 2 * gh) * 4          # x / h / out double-buffered
        work += 12 * bm * gh * 4                    # f32 gate intermediates

        return pl.pallas_call(
            _block_gru_kernel,
            out_shape=jax.ShapeDtypeStruct((B_pad, kb * gh), x.dtype),
            grid=grid,
            in_specs=in_specs,
            out_specs=out_specs,
            compiler_params=pltpu.CompilerParams(
                dimension_semantics=("parallel", "parallel"),
                vmem_limit_bytes=self._vmem_limit(work),
            ),
        )(x, h, *self._W, *self._Bvec)

    # -- forward ---------------------------------------------------------------
    def __call__(self, x, h):
        B, ninp = x.shape
        assert ninp == self.ninp and h.shape == (B, self.nhid)
        kb, gh = self._kb, self._gh
        nhid_eff = kb * gh

        bm = self._pick_bm(B)
        B_pad = _round_up(B, bm)
        if B_pad != B:
            x = jnp.pad(x, ((0, B_pad - B), (0, 0)))
            h = jnp.pad(h, ((0, B_pad - B), (0, 0)))
        if nhid_eff != self.nhid:
            h = jnp.pad(h, ((0, 0), (0, nhid_eff - self.nhid)))

        grid = (kb, B_pad // bm)    # blocks outermost -> weights revisited, not re-fetched

        try:
            out = self._pallas_forward(x, h, grid, bm, single_buf=self._single_buf)
        except Exception:
            if not self._single_buf:
                raise
            # pipeline_mode / Buffered(1) unsupported on this version: fall back.
            self._single_buf = False
            out = self._pallas_forward(x, h, grid, bm, single_buf=False)

        if B_pad != B or nhid_eff != self.nhid:
            out = out[:B, :self.nhid]
        return out


# ----------------------------------------------------------------------------
# Pure-JAX reference (mxu_dtype lets the test match the kernel's bf16 operands)
# ----------------------------------------------------------------------------
def _ref_block_gru(x, h, w_ih, w_hh, b_ih, b_hh, mask_hx, mask_hh,
                   mxu_dtype=jnp.float32):
    w_ih = w_ih * mask_hx
    w_hh = w_hh * mask_hh
    gi = jnp.dot(x.astype(mxu_dtype), w_ih.T.astype(mxu_dtype),
                 preferred_element_type=jnp.float32) + b_ih
    gh = jnp.dot(h.astype(mxu_dtype), w_hh.T.astype(mxu_dtype),
                 preferred_element_type=jnp.float32) + b_hh
    i_r, i_z, i_n = jnp.split(gi, 3, axis=1)
    h_r, h_z, h_n = jnp.split(gh, 3, axis=1)
    r = jax.nn.sigmoid(i_r + h_r)
    z = jax.nn.sigmoid(i_z + h_z)
    n = jnp.tanh(i_n + r * h_n)
    return (1.0 - z) * n + z * h.astype(jnp.float32)


# ----------------------------------------------------------------------------
# Demo / smoke test
# ----------------------------------------------------------------------------
if __name__ == "__main__":
    key = jax.random.PRNGKey(0)
    k1, k2, k3, k4, k5, k6 = jax.random.split(key, 6)

    # Config 1: small, non-128-aligned blocks -> dense path (lane-padded hidden).
    B, ninp, nhid, kblk = 8, 64, 32, 4
    m1 = BlockGRU(ninp, nhid, kblk, key=k1)
    x1 = jax.random.normal(k2, (B, ninp), dtype=jnp.float32)
    h1 = jax.random.normal(k3, (B, nhid), dtype=jnp.float32)
    o1 = jax.block_until_ready(m1(x1, h1))
    assert o1.shape == (B, nhid)
    r1 = _ref_block_gru(x1, h1, m1.weight_ih, m1.weight_hh, m1.bias_ih, m1.bias_hh,
                        m1.mask_hx, m1.mask_hh, mxu_dtype=jnp.bfloat16)
    assert jnp.allclose(o1, r1, atol=2e-3, rtol=2e-3), "BlockGRU (dense path) mismatch"

    # Config 2: 128-aligned blocks -> block-sparse path, padded batch, multi-step grid.
    B2, ninp2, nhid2, kblk2 = 24, 256, 256, 2
    m2 = BlockGRU(ninp2, nhid2, kblk2, key=k4)
    x2 = jax.random.normal(k5, (B2, ninp2), dtype=jnp.float32)
    h2 = jax.random.normal(k6, (B2, nhid2), dtype=jnp.float32)
    o2 = jax.block_until_ready(m2(x2, h2))
    assert o2.shape == (B2, nhid2)
    r2 = _ref_block_gru(x2, h2, m2.weight_ih, m2.weight_hh, m2.bias_ih, m2.bias_hh,
                        m2.mask_hx, m2.mask_hh, mxu_dtype=jnp.bfloat16)
    assert jnp.allclose(o2, r2, atol=2e-3, rtol=2e-3), "BlockGRU (block path) mismatch"

    print("KERNEL_OK")
</pallas_src>

<mosaic_0001>
module attributes {stable_mosaic.version = 11 : i64} {
  func.func @_block_gru_kernel(%arg0: i32, %arg1: i32, %arg2: memref<8x64xf32, #tpu.memory_space<vmem>>, %arg3: memref<8x128xf32, #tpu.memory_space<vmem>>, %arg4: memref<1x64x128xbf16, #tpu.memory_space<vmem>>, %arg5: memref<1x64x128xbf16, #tpu.memory_space<vmem>>, %arg6: memref<1x64x128xbf16, #tpu.memory_space<vmem>>, %arg7: memref<1x128x128xbf16, #tpu.memory_space<vmem>>, %arg8: memref<1x128x128xbf16, #tpu.memory_space<vmem>>, %arg9: memref<1x128x128xbf16, #tpu.memory_space<vmem>>, %arg10: memref<1x1x128xf32, #tpu.memory_space<vmem>>, %arg11: memref<1x1x128xf32, #tpu.memory_space<vmem>>, %arg12: memref<1x1x128xf32, #tpu.memory_space<vmem>>, %arg13: memref<1x1x128xf32, #tpu.memory_space<vmem>>, %arg14: memref<8x128xf32, #tpu.memory_space<vmem>>) attributes {dimension_semantics = [#tpu.dimension_semantics<parallel>, #tpu.dimension_semantics<parallel>], iteration_bounds = array<i64: 1, 1>, scalar_prefetch = 0 : i64, scratch_operands = 0 : i64, tpu.core_type = #tpu.core_type<tc>, window_params = [{transform_indices = @transform_0, window_bounds = array<i64: 8, 64>}, {transform_indices = @transform_1, window_bounds = array<i64: 8, 128>}, {pipeline_mode = #tpu.pipeline_mode<synchronous>, transform_indices = @transform_2, window_bounds = array<i64: 1, 64, 128>}, {pipeline_mode = #tpu.pipeline_mode<synchronous>, transform_indices = @transform_3, window_bounds = array<i64: 1, 64, 128>}, {pipeline_mode = #tpu.pipeline_mode<synchronous>, transform_indices = @transform_4, window_bounds = array<i64: 1, 64, 128>}, {pipeline_mode = #tpu.pipeline_mode<synchronous>, transform_indices = @transform_5, window_bounds = array<i64: 1, 128, 128>}, {pipeline_mode = #tpu.pipeline_mode<synchronous>, transform_indices = @transform_6, window_bounds = array<i64: 1, 128, 128>}, {pipeline_mode = #tpu.pipeline_mode<synchronous>, transform_indices = @transform_7, window_bounds = array<i64: 1, 128, 128>}, {pipeline_mode = #tpu.pipeline_mode<synchronous>, transform_indices = @transform_8, window_bounds = array<i64: 1, 1, 128>}, {pipeline_mode = #tpu.pipeline_mode<synchronous>, transform_indices = @transform_9, window_bounds = array<i64: 1, 1, 128>}, {pipeline_mode = #tpu.pipeline_mode<synchronous>, transform_indices = @transform_10, window_bounds = array<i64: 1, 1, 128>}, {pipeline_mode = #tpu.pipeline_mode<synchronous>, transform_indices = @transform_11, window_bounds = array<i64: 1, 1, 128>}, {transform_indices = @transform_12, window_bounds = array<i64: 8, 128>}]} {
    %c0 = arith.constant 0 : index
    %c0_0 = arith.constant 0 : index
    %0 = vector.load %arg2[%c0, %c0_0] : memref<8x64xf32, #tpu.memory_space<vmem>>, vector<8x64xf32>
    %c0_1 = arith.constant 0 : index
    %c0_2 = arith.constant 0 : index
    %1 = vector.load %arg3[%c0_1, %c0_2] : memref<8x128xf32, #tpu.memory_space<vmem>>, vector<8x128xf32>
    %2 = arith.truncf %0 : vector<8x64xf32> to vector<8x64xbf16>
    %3 = arith.truncf %1 : vector<8x128xf32> to vector<8x128xbf16>
    %c0_3 = arith.constant 0 : index
    %c0_4 = arith.constant 0 : index
    %c0_5 = arith.constant 0 : index
    %4 = vector.load %arg4[%c0_3, %c0_4, %c0_5] : memref<1x64x128xbf16, #tpu.memory_space<vmem>>, vector<1x64x128xbf16>
    %5 = vector.shape_cast %4 : vector<1x64x128xbf16> to vector<64x128xbf16>
    %cst = arith.constant dense<0.000000e+00> : vector<8x128xf32>
    %6 = tpu.matmul %2, %5, %cst {dimension_numbers = #tpu.dot_dimension_numbers<[1], [0], [0], [1], [0, 0, 1, 1], [], []>} : vector<8x64xbf16>, vector<64x128xbf16>, vector<8x128xf32> -> vector<8x128xf32>
    %c0_6 = arith.constant 0 : index
    %c0_7 = arith.constant 0 : index
    %c0_8 = arith.constant 0 : index
    %7 = vector.load %arg7[%c0_6, %c0_7, %c0_8] : memref<1x128x128xbf16, #tpu.memory_space<vmem>>, vector<1x128x128xbf16>
    %8 = vector.shape_cast %7 : vector<1x128x128xbf16> to vector<128x128xbf16>
    %cst_9 = arith.constant dense<0.000000e+00> : vector<8x128xf32>
    %9 = tpu.matmul %3, %8, %cst_9 {dimension_numbers = #tpu.dot_dimension_numbers<[1], [0], [0], [1], [0, 0, 1, 1], [], []>} : vector<8x128xbf16>, vector<128x128xbf16>, vector<8x128xf32> -> vector<8x128xf32>
    %10 = arith.addf %6, %9 : vector<8x128xf32>
    %c0_10 = arith.constant 0 : index
    %c0_11 = arith.constant 0 : index
    %c0_12 = arith.constant 0 : index
    %11 = vector.load %arg10[%c0_10, %c0_11, %c0_12] : memref<1x1x128xf32, #tpu.memory_space<vmem>>, vector<1x1x128xf32>
    %12 = vector.shape_cast %11 : vector<1x1x128xf32> to vector<1x128xf32>
    %13 = vector.broadcast %12 : vector<1x128xf32> to vector<8x128xf32>
    %14 = arith.addf %10, %13 : vector<8x128xf32>
    %15 = arith.negf %14 : vector<8x128xf32>
    %16 = math.exp %15 : vector<8x128xf32>
    %cst_13 = arith.constant 1.000000e+00 : f32
    %17 = vector.broadcast %cst_13 : f32 to vector<8x128xf32>
    %18 = arith.addf %17, %16 : vector<8x128xf32>
    %19 = arith.divf %17, %18 : vector<8x128xf32>
    %c0_14 = arith.constant 0 : index
    %c0_15 = arith.constant 0 : index
    %c0_16 = arith.constant 0 : index
    %20 = vector.load %arg5[%c0_14, %c0_15, %c0_16] : memref<1x64x128xbf16, #tpu.memory_space<vmem>>, vector<1x64x128xbf16>
    %21 = vector.shape_cast %20 : vector<1x64x128xbf16> to vector<64x128xbf16>
    %cst_17 = arith.constant dense<0.000000e+00> : vector<8x128xf32>
    %22 = tpu.matmul %2, %21, %cst_17 {dimension_numbers = #tpu.dot_dimension_numbers<[1], [0], [0], [1], [0, 0, 1, 1], [], []>} : vector<8x64xbf16>, vector<64x128xbf16>, vector<8x128xf32> -> vector<8x128xf32>
    %c0_18 = arith.constant 0 : index
    %c0_19 = arith.constant 0 : index
    %c0_20 = arith.constant 0 : index
    %23 = vector.load %arg8[%c0_18, %c0_19, %c0_20] : memref<1x128x128xbf16, #tpu.memory_space<vmem>>, vector<1x128x128xbf16>
    %24 = vector.shape_cast %23 : vector<1x128x128xbf16> to vector<128x128xbf16>
    %cst_21 = arith.constant dense<0.000000e+00> : vector<8x128xf32>
    %25 = tpu.matmul %3, %24, %cst_21 {dimension_numbers = #tpu.dot_dimension_numbers<[1], [0], [0], [1], [0, 0, 1, 1], [], []>} : vector<8x128xbf16>, vector<128x128xbf16>, vector<8x128xf32> -> vector<8x128xf32>
    %26 = arith.addf %22, %25 : vector<8x128xf32>
    %c0_22 = arith.constant 0 : index
    %c0_23 = arith.constant 0 : index
    %c0_24 = arith.constant 0 : index
    %27 = vector.load %arg11[%c0_22, %c0_23, %c0_24] : memref<1x1x128xf32, #tpu.memory_space<vmem>>, vector<1x1x128xf32>
    %28 = vector.shape_cast %27 : vector<1x1x128xf32> to vector<1x128xf32>
    %29 = vector.broadcast %28 : vector<1x128xf32> to vector<8x128xf32>
    %30 = arith.addf %26, %29 : vector<8x128xf32>
    %31 = arith.negf %30 : vector<8x128xf32>
    %32 = math.exp %31 : vector<8x128xf32>
    %cst_25 = arith.constant 1.000000e+00 : f32
    %33 = vector.broadcast %cst_25 : f32 to vector<8x128xf32>
    %34 = arith.addf %33, %32 : vector<8x128xf32>
    %35 = arith.divf %33, %34 : vector<8x128xf32>
    %c0_26 = arith.constant 0 : index
    %c0_27 = arith.constant 0 : index
    %c0_28 = arith.constant 0 : index
    %36 = vector.load %arg9[%c0_26, %c0_27, %c0_28] : memref<1x128x128xbf16, #tpu.memory_space<vmem>>, vector<1x128x128xbf16>
    %37 = vector.shape_cast %36 : vector<1x128x128xbf16> to vector<128x128xbf16>
    %cst_29 = arith.constant dense<0.000000e+00> : vector<8x128xf32>
    %38 = tpu.matmul %3, %37, %cst_29 {dimension_numbers = #tpu.dot_dimension_numbers<[1], [0], [0], [1], [0, 0, 1, 1], [], []>} : vector<8x128xbf16>, vector<128x128xbf16>, vector<8x128xf32> -> vector<8x128xf32>
    %c0_30 = arith.constant 0 : index
    %c0_31 = arith.constant 0 : index
    %c0_32 = arith.constant 0 : index
    %39 = vector.load %arg13[%c0_30, %c0_31, %c0_32] : memref<1x1x128xf32, #tpu.memory_space<vmem>>, vector<1x1x128xf32>
    %40 = vector.shape_cast %39 : vector<1x1x128xf32> to vector<1x128xf32>
    %41 = vector.broadcast %40 : vector<1x128xf32> to vector<8x128xf32>
    %42 = arith.addf %38, %41 : vector<8x128xf32>
    %c0_33 = arith.constant 0 : index
    %c0_34 = arith.constant 0 : index
    %c0_35 = arith.constant 0 : index
    %43 = vector.load %arg6[%c0_33, %c0_34, %c0_35] : memref<1x64x128xbf16, #tpu.memory_space<vmem>>, vector<1x64x128xbf16>
    %44 = vector.shape_cast %43 : vector<1x64x128xbf16> to vector<64x128xbf16>
    %cst_36 = arith.constant dense<0.000000e+00> : vector<8x128xf32>
    %45 = tpu.matmul %2, %44, %cst_36 {dimension_numbers = #tpu.dot_dimension_numbers<[1], [0], [0], [1], [0, 0, 1, 1], [], []>} : vector<8x64xbf16>, vector<64x128xbf16>, vector<8x128xf32> -> vector<8x128xf32>
    %c0_37 = arith.constant 0 : index
    %c0_38 = arith.constant 0 : index
    %c0_39 = arith.constant 0 : index
    %46 = vector.load %arg12[%c0_37, %c0_38, %c0_39] : memref<1x1x128xf32, #tpu.memory_space<vmem>>, vector<1x1x128xf32>
    %47 = vector.shape_cast %46 : vector<1x1x128xf32> to vector<1x128xf32>
    %48 = vector.broadcast %47 : vector<1x128xf32> to vector<8x128xf32>
    %49 = arith.addf %45, %48 : vector<8x128xf32>
    %50 = arith.mulf %19, %42 : vector<8x128xf32>
    %51 = arith.addf %49, %50 : vector<8x128xf32>
    %52 = math.tanh %51 : vector<8x128xf32>
    %cst_40 = arith.constant 1.000000e+00 : f32
    %53 = vector.broadcast %cst_40 : f32 to vector<8x128xf32>
    %54 = arith.subf %53, %35 : vector<8x128xf32>
    %55 = arith.mulf %54, %52 : vector<8x128xf32>
    %56 = arith.mulf %35, %1 : vector<8x128xf32>
    %57 = arith.addf %55, %56 : vector<8x128xf32>
    %c0_41 = arith.constant 0 : index
    %c0_42 = arith.constant 0 : index
    %58 = vector.load %arg14[%c0_41, %c0_42] : memref<8x128xf32, #tpu.memory_space<vmem>>, vector<8x128xf32>
    tpu.vector_store %arg14[%c0_41, %c0_42], %57 {strides = array<i32>} : memref<8x128xf32, #tpu.memory_space<vmem>>, vector<8x128xf32>,
    return
  }
  func.func @transform_0(%arg0: i32, %arg1: i32) -> (i32, i32) {
    %c0_i32 = arith.constant 0 : i32
    return %arg1, %arg0 : i32, i32
  }
  func.func @transform_1(%arg0: i32, %arg1: i32) -> (i32, i32) {
    %c0_i32 = arith.constant 0 : i32
    return %arg1, %arg0 : i32, i32
  }
  func.func @transform_2(%arg0: i32, %arg1: i32) -> (i32, i32, i32) {
    %c0_i32 = arith.constant 0 : i32
    %c0_i32_0 = arith.constant 0 : i32
    %c0_i32_1 = arith.constant 0 : i32
    return %arg0, %c0_i32, %c0_i32_0 : i32, i32, i32
  }
  func.func @transform_3(%arg0: i32, %arg1: i32) -> (i32, i32, i32) {
    %c0_i32 = arith.constant 0 : i32
    %c0_i32_0 = arith.constant 0 : i32
    %c0_i32_1 = arith.constant 0 : i32
    return %arg0, %c0_i32, %c0_i32_0 : i32, i32, i32
  }
  func.func @transform_4(%arg0: i32, %arg1: i32) -> (i32, i32, i32) {
    %c0_i32 = arith.constant 0 : i32
    %c0_i32_0 = arith.constant 0 : i32
    %c0_i32_1 = arith.constant 0 : i32
    return %arg0, %c0_i32, %c0_i32_0 : i32, i32, i32
  }
  func.func @transform_5(%arg0: i32, %arg1: i32) -> (i32, i32, i32) {
    %c0_i32 = arith.constant 0 : i32
    %c0_i32_0 = arith.constant 0 : i32
    %c0_i32_1 = arith.constant 0 : i32
    return %arg0, %c0_i32, %c0_i32_0 : i32, i32, i32
  }
  func.func @transform_6(%arg0: i32, %arg1: i32) -> (i32, i32, i32) {
    %c0_i32 = arith.constant 0 : i32
    %c0_i32_0 = arith.constant 0 : i32
    %c0_i32_1 = arith.constant 0 : i32
    return %arg0, %c0_i32, %c0_i32_0 : i32, i32, i32
  }
  func.func @transform_7(%arg0: i32, %arg1: i32) -> (i32, i32, i32) {
    %c0_i32 = arith.constant 0 : i32
    %c0_i32_0 = arith.constant 0 : i32
    %c0_i32_1 = arith.constant 0 : i32
    return %arg0, %c0_i32, %c0_i32_0 : i32, i32, i32
  }
  func.func @transform_8(%arg0: i32, %arg1: i32) -> (i32, i32, i32) {
    %c0_i32 = arith.constant 0 : i32
    %c0_i32_0 = arith.constant 0 : i32
    %c0_i32_1 = arith.constant 0 : i32
    return %arg0, %c0_i32, %c0_i32_0 : i32, i32, i32
  }
  func.func @transform_9(%arg0: i32, %arg1: i32) -> (i32, i32, i32) {
    %c0_i32 = arith.constant 0 : i32
    %c0_i32_0 = arith.constant 0 : i32
    %c0_i32_1 = arith.constant 0 : i32
    return %arg0, %c0_i32, %c0_i32_0 : i32, i32, i32
  }
  func.func @transform_10(%arg0: i32, %arg1: i32) -> (i32, i32, i32) {
    %c0_i32 = arith.constant 0 : i32
    %c0_i32_0 = arith.constant 0 : i32
    %c0_i32_1 = arith.constant 0 : i32
    return %arg0, %c0_i32, %c0_i32_0 : i32, i32, i32
  }
  func.func @transform_11(%arg0: i32, %arg1: i32) -> (i32, i32, i32) {
    %c0_i32 = arith.constant 0 : i32
    %c0_i32_0 = arith.constant 0 : i32
    %c0_i32_1 = arith.constant 0 : i32
    return %arg0, %c0_i32, %c0_i32_0 : i32, i32, i32
  }
  func.func @transform_12(%arg0: i32, %arg1: i32) -> (i32, i32) {
    %c0_i32 = arith.constant 0 : i32
    return %arg1, %arg0 : i32, i32
  }
}

module attributes {stable_mosaic.version = 11 : i64} {
  func.func @_block_gru_kernel(%arg0: i32, %arg1: i32, %arg2: memref<8x64xf32, #tpu.memory_space<vmem>>, %arg3: memref<8x128xf32, #tpu.memory_space<vmem>>, %arg4: memref<1x64x128xbf16, #tpu.memory_space<vmem>>, %arg5: memref<1x64x128xbf16, #tpu.memory_space<vmem>>, %arg6: memref<1x64x128xbf16, #tpu.memory_space<vmem>>, %arg7: memref<1x128x128xbf16, #tpu.memory_space<vmem>>, %arg8: memref<1x128x128xbf16, #tpu.memory_space<vmem>>, %arg9: memref<1x128x128xbf16, #tpu.memory_space<vmem>>, %arg10: memref<1x1x128xf32, #tpu.memory_space<vmem>>, %arg11: memref<1x1x128xf32, #tpu.memory_space<vmem>>, %arg12: memref<1x1x128xf32, #tpu.memory_space<vmem>>, %arg13: memref<1x1x128xf32, #tpu.memory_space<vmem>>, %arg14: memref<8x128xf32, #tpu.memory_space<vmem>>) attributes {dimension_semantics = [#tpu.dimension_semantics<parallel>, #tpu.dimension_semantics<parallel>], iteration_bounds = array<i64: 1, 1>, scalar_prefetch = 0 : i64, scratch_operands = 0 : i64, tpu.core_type = #tpu.core_type<tc>, window_params = [{transform_indices = @transform_0, window_bounds = array<i64: 8, 64>}, {transform_indices = @transform_1, window_bounds = array<i64: 8, 128>}, {transform_indices = @transform_2, window_bounds = array<i64: 1, 64, 128>}, {transform_indices = @transform_3, window_bounds = array<i64: 1, 64, 128>}, {transform_indices = @transform_4, window_bounds = array<i64: 1, 64, 128>}, {transform_indices = @transform_5, window_bounds = array<i64: 1, 128, 128>}, {transform_indices = @transform_6, window_bounds = array<i64: 1, 128, 128>}, {transform_indices = @transform_7, window_bounds = array<i64: 1, 128, 128>}, {transform_indices = @transform_8, window_bounds = array<i64: 1, 1, 128>}, {transform_indices = @transform_9, window_bounds = array<i64: 1, 1, 128>}, {transform_indices = @transform_10, window_bounds = array<i64: 1, 1, 128>}, {transform_indices = @transform_11, window_bounds = array<i64: 1, 1, 128>}, {transform_indices = @transform_12, window_bounds = array<i64: 8, 128>}]} {
    %c0 = arith.constant 0 : index
    %c0_0 = arith.constant 0 : index
    %0 = vector.load %arg2[%c0, %c0_0] : memref<8x64xf32, #tpu.memory_space<vmem>>, vector<8x64xf32>
    %c0_1 = arith.constant 0 : index
    %c0_2 = arith.constant 0 : index
    %1 = vector.load %arg3[%c0_1, %c0_2] : memref<8x128xf32, #tpu.memory_space<vmem>>, vector<8x128xf32>
    %2 = arith.truncf %0 : vector<8x64xf32> to vector<8x64xbf16>
    %3 = arith.truncf %1 : vector<8x128xf32> to vector<8x128xbf16>
    %c0_3 = arith.constant 0 : index
    %c0_4 = arith.constant 0 : index
    %c0_5 = arith.constant 0 : index
    %4 = vector.load %arg4[%c0_3, %c0_4, %c0_5] : memref<1x64x128xbf16, #tpu.memory_space<vmem>>, vector<1x64x128xbf16>
    %5 = vector.shape_cast %4 : vector<1x64x128xbf16> to vector<64x128xbf16>
    %cst = arith.constant dense<0.000000e+00> : vector<8x128xf32>
    %6 = tpu.matmul %2, %5, %cst {dimension_numbers = #tpu.dot_dimension_numbers<[1], [0], [0], [1], [0, 0, 1, 1], [], []>} : vector<8x64xbf16>, vector<64x128xbf16>, vector<8x128xf32> -> vector<8x128xf32>
    %c0_6 = arith.constant 0 : index
    %c0_7 = arith.constant 0 : index
    %c0_8 = arith.constant 0 : index
    %7 = vector.load %arg7[%c0_6, %c0_7, %c0_8] : memref<1x128x128xbf16, #tpu.memory_space<vmem>>, vector<1x128x128xbf16>
    %8 = vector.shape_cast %7 : vector<1x128x128xbf16> to vector<128x128xbf16>
    %cst_9 = arith.constant dense<0.000000e+00> : vector<8x128xf32>
    %9 = tpu.matmul %3, %8, %cst_9 {dimension_numbers = #tpu.dot_dimension_numbers<[1], [0], [0], [1], [0, 0, 1, 1], [], []>} : vector<8x128xbf16>, vector<128x128xbf16>, vector<8x128xf32> -> vector<8x128xf32>
    %10 = arith.addf %6, %9 : vector<8x128xf32>
    %c0_10 = arith.constant 0 : index
    %c0_11 = arith.constant 0 : index
    %c0_12 = arith.constant 0 : index
    %11 = vector.load %arg10[%c0_10, %c0_11, %c0_12] : memref<1x1x128xf32, #tpu.memory_space<vmem>>, vector<1x1x128xf32>
    %12 = vector.shape_cast %11 : vector<1x1x128xf32> to vector<1x128xf32>
    %13 = vector.broadcast %12 : vector<1x128xf32> to vector<8x128xf32>
    %14 = arith.addf %10, %13 : vector<8x128xf32>
    %15 = arith.negf %14 : vector<8x128xf32>
    %16 = math.exp %15 : vector<8x128xf32>
    %cst_13 = arith.constant 1.000000e+00 : f32
    %17 = vector.broadcast %cst_13 : f32 to vector<8x128xf32>
    %18 = arith.addf %17, %16 : vector<8x128xf32>
    %19 = arith.divf %17, %18 : vector<8x128xf32>
    %c0_14 = arith.constant 0 : index
    %c0_15 = arith.constant 0 : index
    %c0_16 = arith.constant 0 : index
    %20 = vector.load %arg5[%c0_14, %c0_15, %c0_16] : memref<1x64x128xbf16, #tpu.memory_space<vmem>>, vector<1x64x128xbf16>
    %21 = vector.shape_cast %20 : vector<1x64x128xbf16> to vector<64x128xbf16>
    %cst_17 = arith.constant dense<0.000000e+00> : vector<8x128xf32>
    %22 = tpu.matmul %2, %21, %cst_17 {dimension_numbers = #tpu.dot_dimension_numbers<[1], [0], [0], [1], [0, 0, 1, 1], [], []>} : vector<8x64xbf16>, vector<64x128xbf16>, vector<8x128xf32> -> vector<8x128xf32>
    %c0_18 = arith.constant 0 : index
    %c0_19 = arith.constant 0 : index
    %c0_20 = arith.constant 0 : index
    %23 = vector.load %arg8[%c0_18, %c0_19, %c0_20] : memref<1x128x128xbf16, #tpu.memory_space<vmem>>, vector<1x128x128xbf16>
    %24 = vector.shape_cast %23 : vector<1x128x128xbf16> to vector<128x128xbf16>
    %cst_21 = arith.constant dense<0.000000e+00> : vector<8x128xf32>
    %25 = tpu.matmul %3, %24, %cst_21 {dimension_numbers = #tpu.dot_dimension_numbers<[1], [0], [0], [1], [0, 0, 1, 1], [], []>} : vector<8x128xbf16>, vector<128x128xbf16>, vector<8x128xf32> -> vector<8x128xf32>
    %26 = arith.addf %22, %25 : vector<8x128xf32>
    %c0_22 = arith.constant 0 : index
    %c0_23 = arith.constant 0 : index
    %c0_24 = arith.constant 0 : index
    %27 = vector.load %arg11[%c0_22, %c0_23, %c0_24] : memref<1x1x128xf32, #tpu.memory_space<vmem>>, vector<1x1x128xf32>
    %28 = vector.shape_cast %27 : vector<1x1x128xf32> to vector<1x128xf32>
    %29 = vector.broadcast %28 : vector<1x128xf32> to vector<8x128xf32>
    %30 = arith.addf %26, %29 : vector<8x128xf32>
    %31 = arith.negf %30 : vector<8x128xf32>
    %32 = math.exp %31 : vector<8x128xf32>
    %cst_25 = arith.constant 1.000000e+00 : f32
    %33 = vector.broadcast %cst_25 : f32 to vector<8x128xf32>
    %34 = arith.addf %33, %32 : vector<8x128xf32>
    %35 = arith.divf %33, %34 : vector<8x128xf32>
    %c0_26 = arith.constant 0 : index
    %c0_27 = arith.constant 0 : index
    %c0_28 = arith.constant 0 : index
    %36 = vector.load %arg9[%c0_26, %c0_27, %c0_28] : memref<1x128x128xbf16, #tpu.memory_space<vmem>>, vector<1x128x128xbf16>
    %37 = vector.shape_cast %36 : vector<1x128x128xbf16> to vector<128x128xbf16>
    %cst_29 = arith.constant dense<0.000000e+00> : vector<8x128xf32>
    %38 = tpu.matmul %3, %37, %cst_29 {dimension_numbers = #tpu.dot_dimension_numbers<[1], [0], [0], [1], [0, 0, 1, 1], [], []>} : vector<8x128xbf16>, vector<128x128xbf16>, vector<8x128xf32> -> vector<8x128xf32>
    %c0_30 = arith.constant 0 : index
    %c0_31 = arith.constant 0 : index
    %c0_32 = arith.constant 0 : index
    %39 = vector.load %arg13[%c0_30, %c0_31, %c0_32] : memref<1x1x128xf32, #tpu.memory_space<vmem>>, vector<1x1x128xf32>
    %40 = vector.shape_cast %39 : vector<1x1x128xf32> to vector<1x128xf32>
    %41 = vector.broadcast %40 : vector<1x128xf32> to vector<8x128xf32>
    %42 = arith.addf %38, %41 : vector<8x128xf32>
    %c0_33 = arith.constant 0 : index
    %c0_34 = arith.constant 0 : index
    %c0_35 = arith.constant 0 : index
    %43 = vector.load %arg6[%c0_33, %c0_34, %c0_35] : memref<1x64x128xbf16, #tpu.memory_space<vmem>>, vector<1x64x128xbf16>
    %44 = vector.shape_cast %43 : vector<1x64x128xbf16> to vector<64x128xbf16>
    %cst_36 = arith.constant dense<0.000000e+00> : vector<8x128xf32>
    %45 = tpu.matmul %2, %44, %cst_36 {dimension_numbers = #tpu.dot_dimension_numbers<[1], [0], [0], [1], [0, 0, 1, 1], [], []>} : vector<8x64xbf16>, vector<64x128xbf16>, vector<8x128xf32> -> vector<8x128xf32>
    %c0_37 = arith.constant 0 : index
    %c0_38 = arith.constant 0 : index
    %c0_39 = arith.constant 0 : index
    %46 = vector.load %arg12[%c0_37, %c0_38, %c0_39] : memref<1x1x128xf32, #tpu.memory_space<vmem>>, vector<1x1x128xf32>
    %47 = vector.shape_cast %46 : vector<1x1x128xf32> to vector<1x128xf32>
    %48 = vector.broadcast %47 : vector<1x128xf32> to vector<8x128xf32>
    %49 = arith.addf %45, %48 : vector<8x128xf32>
    %50 = arith.mulf %19, %42 : vector<8x128xf32>
    %51 = arith.addf %49, %50 : vector<8x128xf32>
    %52 = math.tanh %51 : vector<8x128xf32>
    %cst_40 = arith.constant 1.000000e+00 : f32
    %53 = vector.broadcast %cst_40 : f32 to vector<8x128xf32>
    %54 = arith.subf %53, %35 : vector<8x128xf32>
    %55 = arith.mulf %54, %52 : vector<8x128xf32>
    %56 = arith.mulf %35, %1 : vector<8x128xf32>
    %57 = arith.addf %55, %56 : vector<8x128xf32>
    %c0_41 = arith.constant 0 : index
    %c0_42 = arith.constant 0 : index
    %58 = vector.load %arg14[%c0_41, %c0_42] : memref<8x128xf32, #tpu.memory_space<vmem>>, vector<8x128xf32>
    tpu.vector_store %arg14[%c0_41, %c0_42], %57 {strides = array<i32>} : memref<8x128xf32, #tpu.memory_space<vmem>>, vector<8x128xf32>,
    return
  }
  func.func @transform_0(%arg0: i32, %arg1: i32) -> (i32, i32) {
    %c0_i32 = arith.constant 0 : i32
    return %arg1, %arg0 : i32, i32
  }
  func.func @transform_1(%arg0: i32, %arg1: i32) -> (i32, i32) {
    %c0_i32 = arith.constant 0 : i32
    return %arg1, %arg0 : i32, i32
  }
  func.func @transform_2(%arg0: i32, %arg1: i32) -> (i32, i32, i32) {
    %c0_i32 = arith.constant 0 : i32
    %c0_i32_0 = arith.constant 0 : i32
    %c0_i32_1 = arith.constant 0 : i32
    return %arg0, %c0_i32, %c0_i32_0 : i32, i32, i32
  }
  func.func @transform_3(%arg0: i32, %arg1: i32) -> (i32, i32, i32) {
    %c0_i32 = arith.constant 0 : i32
    %c0_i32_0 = arith.constant 0 : i32
    %c0_i32_1 = arith.constant 0 : i32
    return %arg0, %c0_i32, %c0_i32_0 : i32, i32, i32
  }
  func.func @transform_4(%arg0: i32, %arg1: i32) -> (i32, i32, i32) {
    %c0_i32 = arith.constant 0 : i32
    %c0_i32_0 = arith.constant 0 : i32
    %c0_i32_1 = arith.constant 0 : i32
    return %arg0, %c0_i32, %c0_i32_0 : i32, i32, i32
  }
  func.func @transform_5(%arg0: i32, %arg1: i32) -> (i32, i32, i32) {
    %c0_i32 = arith.constant 0 : i32
    %c0_i32_0 = arith.constant 0 : i32
    %c0_i32_1 = arith.constant 0 : i32
    return %arg0, %c0_i32, %c0_i32_0 : i32, i32, i32
  }
  func.func @transform_6(%arg0: i32, %arg1: i32) -> (i32, i32, i32) {
    %c0_i32 = arith.constant 0 : i32
    %c0_i32_0 = arith.constant 0 : i32
    %c0_i32_1 = arith.constant 0 : i32
    return %arg0, %c0_i32, %c0_i32_0 : i32, i32, i32
  }
  func.func @transform_7(%arg0: i32, %arg1: i32) -> (i32, i32, i32) {
    %c0_i32 = arith.constant 0 : i32
    %c0_i32_0 = arith.constant 0 : i32
    %c0_i32_1 = arith.constant 0 : i32
    return %arg0, %c0_i32, %c0_i32_0 : i32, i32, i32
  }
  func.func @transform_8(%arg0: i32, %arg1: i32) -> (i32, i32, i32) {
    %c0_i32 = arith.constant 0 : i32
    %c0_i32_0 = arith.constant 0 : i32
    %c0_i32_1 = arith.constant 0 : i32
    return %arg0, %c0_i32, %c0_i32_0 : i32, i32, i32
  }
  func.func @transform_9(%arg0: i32, %arg1: i32) -> (i32, i32, i32) {
    %c0_i32 = arith.constant 0 : i32
    %c0_i32_0 = arith.constant 0 : i32
    %c0_i32_1 = arith.constant 0 : i32
    return %arg0, %c0_i32, %c0_i32_0 : i32, i32, i32
  }
  func.func @transform_10(%arg0: i32, %arg1: i32) -> (i32, i32, i32) {
    %c0_i32 = arith.constant 0 : i32
    %c0_i32_0 = arith.constant 0 : i32
    %c0_i32_1 = arith.constant 0 : i32
    return %arg0, %c0_i32, %c0_i32_0 : i32, i32, i32
  }
  func.func @transform_11(%arg0: i32, %arg1: i32) -> (i32, i32, i32) {
    %c0_i32 = arith.constant 0 : i32
    %c0_i32_0 = arith.constant 0 : i32
    %c0_i32_1 = arith.constant 0 : i32
    return %arg0, %c0_i32, %c0_i32_0 : i32, i32, i32
  }
  func.func @transform_12(%arg0: i32, %arg1: i32) -> (i32, i32) {
    %c0_i32 = arith.constant 0 : i32
    return %arg1, %arg0 : i32, i32
  }
}

</mosaic_0001>

<bundles_post_ra>
// kernel: tpu_custom_call.1
= control target key start
LH: loop header
LB: loop body
LE: loop exit
PB: predicated region body
PF: predicated region fallthrough
CT: control target
= control target key end

     0   :  { %17 = vsyncpa [#allocation3], 0  ;;  %s1202_s0 = inlined_call_operand.hbm [shape: f32[8,64], index: 0, kind: input, shape index: {}]   ;;  %s1203_s1 = inlined_call_operand.hbm [shape: f32[8,128], index: 1, kind: input, shape index: {}]   ;;  %s1204_s2 = inlined_call_operand.hbm [shape: bf16[1,64,128], index: 2, kind: input, shape index: {}]   ;;  %s1205_s3 = inlined_call_operand.hbm [shape: bf16[1,64,128], index: 3, kind: input, shape index: {}]   ;;  %s1206_s4 = inlined_call_operand.hbm [shape: bf16[1,64,128], index: 4, kind: input, shape index: {}]   ;;  %s1207_s5 = inlined_call_operand.hbm [shape: bf16[1,128,128], index: 5, kind: input, shape index: {}]   ;;  %s1208_s6 = inlined_call_operand.hbm [shape: bf16[1,128,128], index: 6, kind: input, shape index: {}]   ;;  %s1209_s7 = inlined_call_operand.hbm [shape: bf16[1,128,128], index: 7, kind: input, shape index: {}]   ;;  %s1210_s8 = inlined_call_operand.vmem [shape: f32[1,1,128], index: 8, kind: input, shape index: {}]   ;;  %s1211_s9 = inlined_call_operand.vmem [shape: f32[1,1,128], index: 9, kind: input, shape index: {}]   ;;  %s1212_s10 = inlined_call_operand.vmem [shape: f32[1,1,128], index: 10, kind: input, shape index: {}]   ;;  %s1213_s11 = inlined_call_operand.vmem [shape: f32[1,1,128], index: 11, kind: input, shape index: {}]   ;;  %s1214_s12 = inlined_call_operand.hbm [shape: f32[8,128], index: 12, kind: output, shape index: {}]  }
   0x1   :  { %18 = vsyncpa [#allocation6], 0 }
   0x2   :  { %19 = vsyncpa [#allocation9], 0 }
   0x3   :  { %20 = vsyncpa [#allocation12], 0 }
   0x4   :  { %21 = vsyncpa [#allocation15], 0  ;;  %s39_s23 = sshll.u32 %s1203_s1, 4  ;;  %s40_s23 = int_to_ptr.hbm [resolvable:$true] %s39_s23 }
   0x5   :  { %22 = vsyncpa [#allocation4], 0  ;;  %s1061_s24 = smov [#allocation5]   ;;  %s62_s28 = sshll.u32 %s1205_s3, 4  ;;  %s63_s28 = int_to_ptr.hbm [resolvable:$true] %s62_s28 }
   0x6   :  { %s41_s25 = sshll.u32 %s1061_s24, 4  ;;  %s1062_s29 = smov [#allocation8]   ;;  %s42_s25 = int_to_ptr.vmem [resolvable:$true] %s41_s25 }
   0x7   :  { %44 = dma.hbm_to_vmem [thread:$0]  %s40_s23, 128, %s42_s25, [#allocation6]  }
   0x8   :  { %s64_s30 = sshll.u32 %s1062_s29, 4  ;;  %s88_s15 = sshll.u32 %s1207_s5, 4  ;;  %s65_s30 = int_to_ptr.vmem [resolvable:$true] %s64_s30  ;;  %s89_s15 = int_to_ptr.hbm [resolvable:$true] %s88_s15 }
   0x9   :  { %s1063_s1 = smov 64   ;;  %s1064_s16 = smov 4  }
   0xa   :  { %70 = dma.hbm_to_vmem [thread:$0]  %s63_s28, 512, %s65_s30, [#allocation9], %s1063_s1, %s1063_s1, %s1064_s16  }
   0xb   :  { %s28_s19 = sshll.u32 %s1202_s0, 4  ;;  %s1065_s3 = smov [#allocation11]   ;;  %s29_s19 = int_to_ptr.hbm [resolvable:$true] %s28_s19 }
   0xc   :  { %s90_s20 = sshll.u32 %s1065_s3, 4  ;;  %s1066_s5 = smov [#allocation2]   ;;  %s91_s20 = int_to_ptr.vmem [resolvable:$true] %s90_s20 }
   0xd   :  { %96 = dma.hbm_to_vmem [thread:$0]  %s89_s15, 1024, %s91_s20, [#allocation12], %s1063_s1, %s1063_s1, %s1064_s16  }
   0xe   :  { %s30_s21 = sshll.u32 %s1066_s5, 4  ;;  %s49_s24 = sshll.u32 %s1204_s2, 4  ;;  %s31_s21 = int_to_ptr.vmem [resolvable:$true] %s30_s21  ;;  %s50_s24 = int_to_ptr.hbm [resolvable:$true] %s49_s24 }
   0xf   :  { %33 = dma.hbm_to_vmem [thread:$0]  %s29_s19, 128, %s31_s21, [#allocation3]  }
  0x10   :  { %s75_s0 = sshll.u32 %s1206_s4, 4  ;;  %s1067_s27 = smov [#allocation7]   ;;  %s76_s0 = int_to_ptr.hbm [resolvable:$true] %s75_s0 }
  0x11   :  { %s51_s28 = sshll.u32 %s1067_s27, 4  ;;  %s1068_s29 = smov [#allocation10]   ;;  %s52_s28 = int_to_ptr.vmem [resolvable:$true] %s51_s28 }
  0x12   :  { %57 = dma.hbm_to_vmem [thread:$0]  %s50_s24, 512, %s52_s28, [#allocation6], %s1063_s1, %s1063_s1, %s1064_s16  }
  0x13   :  { %s77_s30 = sshll.u32 %s1068_s29, 4  ;;  %s101_s2 = sshll.u32 %s1208_s6, 4  ;;  %s78_s30 = int_to_ptr.vmem [resolvable:$true] %s77_s30  ;;  %s102_s2 = int_to_ptr.hbm [resolvable:$true] %s101_s2 }
  0x14   :  { %83 = dma.hbm_to_vmem [thread:$0]  %s76_s0, 512, %s78_s30, [#allocation9], %s1063_s1, %s1063_s1, %s1064_s16  }
  0x15   :  { %s114_s17 = sshll.u32 %s1209_s7, 4  ;;  %s1069_s18 = smov [#allocation13]   ;;  %s115_s17 = int_to_ptr.hbm [resolvable:$true] %s114_s17 }
  0x16   :  { %s103_s19 = sshll.u32 %s1069_s18, 4  ;;  %s1070_s3 = smov [#allocation14]   ;;  %s104_s19 = int_to_ptr.vmem [resolvable:$true] %s103_s19 }
  0x17   :  { %109 = dma.hbm_to_vmem [thread:$0]  %s102_s2, 1024, %s104_s19, [#allocation12], %s1063_s1, %s1063_s1, %s1064_s16  }
  0x18   :  { %s116_s6 = sshll.u32 %s1070_s3, 4  ;;  %s117_s6 = int_to_ptr.vmem [resolvable:$true] %s116_s6 }
  0x19   :  { %122 = dma.hbm_to_vmem [thread:$0]  %s115_s17, 1024, %s117_s6, [#allocation15], %s1063_s1, %s1063_s1, %s1064_s16  }
  0x1a   :  { %1049 = dma.done.wait [#allocation3], 128  }
  0x1b   :  { %1050 = vsyncadd [#allocation3], 4294967168 }
  0x1c   :  { %1051 = dma.done.wait [#allocation6], 640  }
  0x1d   :  { %1052 = vsyncadd [#allocation6], 4294966656 }
  0x1e   :  { %1053 = dma.done.wait [#allocation9], 1024  }
  0x1f   :  { %1054 = vsyncadd [#allocation9], 4294966272 }
  0x20   :  { %1055 = dma.done.wait [#allocation12], 2048  }
  0x21   :  { %1056 = vsyncadd [#allocation12], 4294965248 }
  0x22   :  { %1057 = dma.done.wait [#allocation15], 1024  }
  0x23   :  { %1058 = vsyncadd [#allocation15], 4294966272  ;;  %v783_v0 = vld [vmem:[#allocation11 + $0x38] sm:$0xff]  ;;  %v782_v3 = vld [vmem:[#allocation11 + $0x30] sm:$0xff]  ;;  %vm277_vm0 = vcmask 523264   ;;  %s609_s24 = sshll.u32 %s1214_s12, 4  ;;  %s610_s24 = int_to_ptr.hbm [resolvable:$true] %s609_s24 }
  0x24   :  { %v795_v1 = vld [vmem:[#allocation13 + $0x38] sm:$0xff]  ;;  %240 = vmatpush.bf16.msra.mxu0 %v783_v0  ;;  %v794_v4 = vld [vmem:[#allocation13 + $0x30] sm:$0xff]  ;;  %v781_v8 = vld [vmem:[#allocation11 + $0x28] sm:$0xff] }
  0x25   :  { %v775_v2 = vld [vmem:[#allocation7 + $0x18] sm:$0xff]  ;;  %390 = vmatpush.bf16.msra.mxu2 %v795_v1  ;;  %v774_v6 = vld [vmem:[#allocation7 + $0x10] sm:$0xff]  ;;  %v793_v9 = vld [vmem:[#allocation13 + $0x28] sm:$0xff] }
  0x26   :  { %v787_v5 = vld [vmem:[#allocation8 + $0x18] sm:$0xff]  ;;  %285 = vmatpush.bf16.msra.mxu1 %v775_v2  ;;  %v786_v7 = vld [vmem:[#allocation8 + $0x10] sm:$0xff]  ;;  %v773_v10 = vld [vmem:[#allocation7 + $0x8] sm:$0xff] }
  0x27   :  { %431 = vmatpush.bf16.msra.mxu3 %v787_v5  ;;  %v785_v11 = vld [vmem:[#allocation8 + $0x8] sm:$0xff]  ;;  %v780_v12 = vld [vmem:[#allocation11 + $0x20] sm:$0xff]  ;;  %v803_v15 = vld [vmem:[#allocation14 + $0x38] sm:$0xff] }
  0x28   :  { %241 = vmatpush.bf16.msra.mxu0 %v782_v3  ;;  %v792_v13 = vld [vmem:[#allocation13 + $0x20] sm:$0xff]  ;;  %v164_v16 = vld [vmem:[#allocation2] sm:$0xff]  ;;  %v807_v18 = vld [vmem:[#allocation10 + $0x18] sm:$0xff] }
  0x29   :  { %391 = vmatpush.bf16.msra.mxu2 %v794_v4  ;;  %v772_v14 = vld [vmem:[#allocation7] sm:$0xff]  ;;  %v779_v19 = vld [vmem:[#allocation11 + $0x18] sm:$0xff]  ;;  %v166_v21 = vpack.c.bf16 %v164_v16, %v164_v16  ;;  %v802_v22 = vld [vmem:[#allocation14 + $0x30] sm:$0xff] }
  0x2a   :  { %286 = vmatpush.bf16.msra.mxu1 %v774_v6  ;;  %v784_v17 = vld [vmem:[#allocation8] sm:$0xff]  ;;  %v791_v20 = vld [vmem:[#allocation13 + $0x18] sm:$0xff]  ;;  %v806_v23 = vld [vmem:[#allocation10 + $0x10] sm:$0xff] }
  0x2b   :  { %432 = vmatpush.bf16.msra.mxu3 %v786_v7  ;;  %v778_v24 = vld [vmem:[#allocation11 + $0x10] sm:$0xff]  ;;  %v801_v26 = vld [vmem:[#allocation14 + $0x28] sm:$0xff]  ;;  %v800_v30 = vld [vmem:[#allocation14 + $0x20] sm:$0xff] }
  0x2c   :  { %242 = vmatpush.bf16.msra.mxu0 %v781_v8  ;;  %v790_v25 = vld [vmem:[#allocation13 + $0x10] sm:$0xff]  ;;  %v805_v27 = vld [vmem:[#allocation10 + $0x8] sm:$0xff]  ;;  %v804_v31 = vld [vmem:[#allocation10] sm:$0xff] }
  0x2d   :  { %392 = vmatpush.bf16.msra.mxu2 %v793_v9  ;;  %v777_v28 = vld [vmem:[#allocation11 + $0x8] sm:$0xff]  ;;  %v776_v32 = vld [vmem:[#allocation11] sm:$0xff]  ;;  %v1181_v34 = vld [vmem:[#allocation5] sm:$0xff] }
  0x2e   :  { %287 = vmatpush.bf16.msra.mxu1 %v773_v10  ;;  %v789_v29 = vld [vmem:[#allocation13 + $0x8] sm:$0xff]  ;;  %v788_v33 = vld [vmem:[#allocation13] sm:$0xff]  ;;  %v799_v35 = vld [vmem:[#allocation14 + $0x18] sm:$0xff]  ;;  %v167_v36 = vpack.c.bf16 %v1181_v34, %v1181_v34 }
  0x2f   :  { %433 = vmatpush.bf16.msra.mxu3 %v785_v11  ;;  %v798_v37 = vld [vmem:[#allocation14 + $0x10] sm:$0xff]  ;;  %v797_v38 = vld [vmem:[#allocation14 + $0x8] sm:$0xff]  ;;  %v796_v39 = vld [vmem:[#allocation14] sm:$0xff] }
  0x30   :  { %243 = vmatpush.bf16.msra.mxu0 %v780_v12  ;;  %v819_v43 = vld [vmem:[%s1210_s8] ss:$0 sm:$0xff] }
  0x31   :  { %393 = vmatpush.bf16.msra.mxu2 %v792_v13  ;;  %v820_v49 = vld [vmem:[%s1211_s9] ss:$0 sm:$0xff] }
  0x32   :  { %288 = vmatpush.bf16.msra.mxu1 %v772_v14  ;;  %v821_v3 = vld [vmem:[%s1213_s11] ss:$0 sm:$0xff] }
  0x33   :  { %434 = vmatpush.bf16.msra.mxu3 %v784_v17  ;;  %v822_v7 = vld [vmem:[%s1212_s10] ss:$0 sm:$0xff]  ;;  %s1071_s10 = smov [#allocation16]  }
  0x34   :  { %244 = vmatpush.bf16.msra.mxu0 %v779_v19  ;;  %s607_s11 = sshll.u32 %s1071_s10, 4  ;;  %s608_s11 = int_to_ptr.vmem [resolvable:$true] %s607_s11 }
  0x35   :  { %394 = vmatpush.bf16.msra.mxu2 %v791_v20  ;;  %671 = vmatmul.msk.bf16.vlgmr.msra.gmra.mxu1 %vm277_vm0, %v166_v21 }
  0x36   :  { %532 = vmatpush.bf16.msrb.mxu1 %v803_v15  ;;  %721 = vmatmul.msk.bf16.vlgmr.msra.gmra.mxu3 %vm277_vm0, %v166_v21 }
  0x37   :  { %585 = vmatpush.bf16.msrb.mxu3 %v807_v18 }
  0x38   :  { %245 = vmatpush.bf16.msra.mxu0 %v778_v24 }
  0x39   :  { %395 = vmatpush.bf16.msra.mxu2 %v790_v25 }
  0x3a   :  { %533 = vmatpush.bf16.msrb.mxu1 %v802_v22 }
  0x3b   :  { %586 = vmatpush.bf16.msrb.mxu3 %v806_v23 }
  0x3c   :  { %246 = vmatpush.bf16.msra.mxu0 %v777_v28 }
  0x3d   :  { %396 = vmatpush.bf16.msra.mxu2 %v789_v29 }
  0x3e   :  { %534 = vmatpush.bf16.msrb.mxu1 %v801_v26 }
  0x3f   :  { %587 = vmatpush.bf16.msrb.mxu3 %v805_v27 }
  0x40   :  { %247 = vmatpush.bf16.msra.mxu0 %v776_v32 }
  0x41   :  { %397 = vmatpush.bf16.msra.mxu2 %v788_v33 }
  0x42   :  { %535 = vmatpush.bf16.msrb.mxu1 %v800_v30 }
  0x43   :  { %588 = vmatpush.bf16.msrb.mxu3 %v804_v31  ;;  %248 = vmatmul.bf16.vlgmr.msra.gmra.mxu0 %v167_v36 }
  0x44   :  { %398 = vmatmul.bf16.vlgmr.msra.gmra.mxu2 %v167_v36 }
  0x46   :  { %536 = vmatpush.bf16.msrb.mxu1 %v799_v35  ;;  %771 = vmatmul.msk.bf16.vlgmr.msrb.gmra.mxu3 %vm277_vm0, %v166_v21 }
  0x4a   :  { %537 = vmatpush.bf16.msrb.mxu1 %v798_v37 }
  0x4e   :  { %538 = vmatpush.bf16.msrb.mxu1 %v797_v38 }
  0x52   :  { %539 = vmatpush.bf16.msrb.mxu1 %v796_v39 }
  0x55   :  { %540 = vmatmul.bf16.vlgmr.msrb.gmra.mxu1 %v167_v36 }
  0xb2   :  { %v290_v40 = vpop.f32.mrf.mxu1 }
  0xb9   :  { %v436_v41 = vpop.f32.mrf.mxu3 }
  0xba   :  { %v292_v42 = vpop.f32.mrf.mxu1 }
  0xc0   :  { %v249_v44 = vpop.f32.mrf.mxu0 }
  0xc1   :  { %v438_v45 = vpop.f32.mrf.mxu3  ;;  %v291_v46 = vadd.f32 %v290_v40, %v249_v44 }
  0xc3   :  { %v298_v47 = vadd.f32 %v819_v43, %v291_v46 }
  0xc5   :  { %v672_v48 = vmul.f32 -1.442695, %v298_v47 }
  0xc7   :  { %v399_v50 = vpop.f32.mrf.mxu2  ;;  %823 = vpow2.f32 %v672_v48 }
  0xc8   :  { %v437_v51 = vadd.f32 %v436_v41, %v399_v50  ;;  %v251_v52 = vpop.f32.mrf.mxu0 }
  0xc9   :  { %v590_v53 = vpop.f32.mrf.mxu3 }
  0xca   :  { %v444_v54 = vadd.f32 %v820_v49, %v437_v51  ;;  %v591_v15 = vadd.f32 %v822_v7, %v590_v53 }
  0xcc   :  { %v722_v55 = vmul.f32 -1.442695, %v444_v54 }
  0xcd   :  { %v824_v56 = vpop.eup %823 }
  0xce   :  { %825 = vpow2.f32 %v722_v55  ;;  %v302_v57 = vadd.f32 1.0, %v824_v56 }
  0xcf   :  { %v401_v58 = vpop.f32.mrf.mxu2 }
  0xd0   :  { %827 = vrcp.f32 %v302_v57  ;;  %v314_v4 = vand.u32 2147483648, %v302_v57  ;;  %v312_v6 = vand.u32 2147483647, %v302_v57  ;;  %vm308_vm2 = vweird.f32 %v302_v57 }
  0xd1   :  { %v592_v60 = vpop.f32.mrf.mxu3 }
  0xd2   :  { %v541_v59 = vpop.f32.mrf.mxu1  ;;  %v315_v12 = vor.u32 1.1754944e-38, %v314_v4  ;;  %vm313_vm4 = vcmp.eq.f32.partialorder %v312_v6, 8.507059e+37 }
  0xd3   :  { %v542_v11 = vadd.f32 %v821_v3, %v541_v59 }
  0xd4   :  { %v826_v61 = vpop.eup %825 }
  0xd5   :  { %v448_v62 = vadd.f32 1.0, %v826_v61 }
  0xd6   :  { %v828_v63 = vpop.eup %827 }
  0xd7   :  { %829 = vrcp.f32 %v448_v62  ;;  %v304_v1 = vmul.f32 %v828_v63, %v302_v57  ;;  %vm309_vm1 = vweird.f32 %v828_v63  ;;  %v460_v19 = vand.u32 2147483648, %v448_v62 }
  0xd8   :  { %vm310_vm3 = vmor %vm308_vm2, %vm309_vm1  ;;  %v458_v20 = vand.u32 2147483647, %v448_v62  ;;  %vm454_vm6 = vweird.f32 %v448_v62 }
  0xd9   :  { %v305_v2 = vsub.f32 1.0, %v304_v1  ;;  %v461_v24 = vor.u32 1.1754944e-38, %v460_v19 }
  0xda   :  { %v543_v0 = vpop.f32.mrf.mxu1  ;;  %vm459_vm8 = vcmp.eq.f32.partialorder %v458_v20, 8.507059e+37 }
  0xdb   :  { %v306_v5 = vmul.f32 %v828_v63, %v305_v2 }
  0xdd   :  { %v830_v8 = vpop.eup %829  ;;  %v307_v10 = vadd.f32 %v828_v63, %v306_v5 }
  0xde   :  { %v450_v9 = vmul.f32 %v830_v8, %v448_v62  ;;  %vm455_vm5 = vweird.f32 %v830_v8 }
  0xdf   :  { %v311_v14 = vsel %vm310_vm3, %v828_v63, %v307_v10  ;;  %vm456_vm7 = vmor %vm454_vm6, %vm455_vm5 }
  0xe0   :  { %v451_v13 = vsub.f32 1.0, %v450_v9  ;;  %v316_v16 = vsel %vm313_vm4, %v315_v12, %v311_v14 }
  0xe1   :  { %v594_v17 = vmul.f32 %v542_v11, %v316_v16 }
  0xe2   :  { %v452_v18 = vmul.f32 %v830_v8, %v451_v13 }
  0xe3   :  { %v595_v21 = vadd.f32 %v594_v17, %v591_v15 }
  0xe4   :  { %v453_v22 = vadd.f32 %v830_v8, %v452_v18 }
  0xe5   :  { %831 = vtanh.f32 %v595_v21 }
  0xe6   :  { %v457_v23 = vsel %vm456_vm7, %v830_v8, %v453_v22 }
  0xe7   :  { %v462_v25 = vsel %vm459_vm8, %v461_v24, %v457_v23 }
  0xe8   :  { %v597_v26 = vsub.f32 1.0, %v462_v25  ;;  %v599_v29 = vmul.f32 %v462_v25, %v1181_v34 }
  0xeb   :  { %v832_v27 = vpop.eup %831 }
  0xec   :  { %v598_v28 = vmul.f32 %v832_v27, %v597_v26 }
  0xee   :  { %v600_v30 = vadd.f32 %v599_v29, %v598_v28 }
  0xf0   :  { %601 = vst [vmem:[#allocation16] sm:$0xff] %v600_v30 }
  0xf1   :  { %612 = dma.vmem_to_hbm [thread:$0]  %s608_s11, 128, %s610_s24, [#allocation4]  }
  0xf2   :  { %1059 = dma.done.wait [#allocation4], 128  }
  0xf3   :  { %1060 = vsyncadd [#allocation4], 4294967168 }
  0xf4   :  { %617 = vsyncpa [#allocation3], 1 }
  0xf5   :  { %618 = vsyncpa [#allocation6], 1 }
  0xf6   :  { %619 = vsyncpa [#allocation9], 1 }
  0xf7   :  { %620 = vsyncpa [#allocation12], 1 }
  0xf8   :  { %621 = vsyncpa [#allocation15], 1 }
  0xf9   :  { %622 = vsyncpa [#allocation4], 1 }

// kernel: tpu_custom_call.1
= control target key start
LH: loop header
LB: loop body
LE: loop exit
PB: predicated region body
PF: predicated region fallthrough
CT: control target
= control target key end

     0   :  { %17 = vsyncpa [#allocation3], 0  ;;  %s1202_s0 = inlined_call_operand.hbm [shape: f32[8,64], index: 0, kind: input, shape index: {}]   ;;  %s1203_s1 = inlined_call_operand.hbm [shape: f32[8,128], index: 1, kind: input, shape index: {}]   ;;  %s1204_s2 = inlined_call_operand.hbm [shape: bf16[1,64,128], index: 2, kind: input, shape index: {}]   ;;  %s1205_s3 = inlined_call_operand.hbm [shape: bf16[1,64,128], index: 3, kind: input, shape index: {}]   ;;  %s1206_s4 = inlined_call_operand.hbm [shape: bf16[1,64,128], index: 4, kind: input, shape index: {}]   ;;  %s1207_s5 = inlined_call_operand.hbm [shape: bf16[1,128,128], index: 5, kind: input, shape index: {}]   ;;  %s1208_s6 = inlined_call_operand.hbm [shape: bf16[1,128,128], index: 6, kind: input, shape index: {}]   ;;  %s1209_s7 = inlined_call_operand.hbm [shape: bf16[1,128,128], index: 7, kind: input, shape index: {}]   ;;  %s1210_s8 = inlined_call_operand.vmem [shape: f32[1,1,128], index: 8, kind: input, shape index: {}]   ;;  %s1211_s9 = inlined_call_operand.vmem [shape: f32[1,1,128], index: 9, kind: input, shape index: {}]   ;;  %s1212_s10 = inlined_call_operand.vmem [shape: f32[1,1,128], index: 10, kind: input, shape index: {}]   ;;  %s1213_s11 = inlined_call_operand.vmem [shape: f32[1,1,128], index: 11, kind: input, shape index: {}]   ;;  %s1214_s12 = inlined_call_operand.hbm [shape: f32[8,128], index: 12, kind: output, shape index: {}]  }
   0x1   :  { %18 = vsyncpa [#allocation6], 0 }
   0x2   :  { %19 = vsyncpa [#allocation9], 0 }
   0x3   :  { %20 = vsyncpa [#allocation12], 0 }
   0x4   :  { %21 = vsyncpa [#allocation15], 0  ;;  %s39_s23 = sshll.u32 %s1203_s1, 4  ;;  %s40_s23 = int_to_ptr.hbm [resolvable:$true] %s39_s23 }
   0x5   :  { %22 = vsyncpa [#allocation4], 0  ;;  %s1061_s24 = smov [#allocation5]   ;;  %s62_s28 = sshll.u32 %s1205_s3, 4  ;;  %s63_s28 = int_to_ptr.hbm [resolvable:$true] %s62_s28 }
   0x6   :  { %s41_s25 = sshll.u32 %s1061_s24, 4  ;;  %s1062_s29 = smov [#allocation8]   ;;  %s42_s25 = int_to_ptr.vmem [resolvable:$true] %s41_s25 }
   0x7   :  { %44 = dma.hbm_to_vmem [thread:$0]  %s40_s23, 128, %s42_s25, [#allocation6]  }
   0x8   :  { %s64_s30 = sshll.u32 %s1062_s29, 4  ;;  %s88_s15 = sshll.u32 %s1207_s5, 4  ;;  %s65_s30 = int_to_ptr.vmem [resolvable:$true] %s64_s30  ;;  %s89_s15 = int_to_ptr.hbm [resolvable:$true] %s88_s15 }
   0x9   :  { %s1063_s1 = smov 64   ;;  %s1064_s16 = smov 4  }
   0xa   :  { %70 = dma.hbm_to_vmem [thread:$0]  %s63_s28, 512, %s65_s30, [#allocation9], %s1063_s1, %s1063_s1, %s1064_s16  }
   0xb   :  { %s28_s19 = sshll.u32 %s1202_s0, 4  ;;  %s1065_s3 = smov [#allocation11]   ;;  %s29_s19 = int_to_ptr.hbm [resolvable:$true] %s28_s19 }
   0xc   :  { %s90_s20 = sshll.u32 %s1065_s3, 4  ;;  %s1066_s5 = smov [#allocation2]   ;;  %s91_s20 = int_to_ptr.vmem [resolvable:$true] %s90_s20 }
   0xd   :  { %96 = dma.hbm_to_vmem [thread:$0]  %s89_s15, 1024, %s91_s20, [#allocation12], %s1063_s1, %s1063_s1, %s1064_s16  }
   0xe   :  { %s30_s21 = sshll.u32 %s1066_s5, 4  ;;  %s49_s24 = sshll.u32 %s1204_s2, 4  ;;  %s31_s21 = int_to_ptr.vmem [resolvable:$true] %s30_s21  ;;  %s50_s24 = int_to_ptr.hbm [resolvable:$true] %s49_s24 }
   0xf   :  { %33 = dma.hbm_to_vmem [thread:$0]  %s29_s19, 128, %s31_s21, [#allocation3]  }
  0x10   :  { %s75_s0 = sshll.u32 %s1206_s4, 4  ;;  %s1067_s27 = smov [#allocation7]   ;;  %s76_s0 = int_to_ptr.hbm [resolvable:$true] %s75_s0 }
  0x11   :  { %s51_s28 = sshll.u32 %s1067_s27, 4  ;;  %s1068_s29 = smov [#allocation10]   ;;  %s52_s28 = int_to_ptr.vmem [resolvable:$true] %s51_s28 }
  0x12   :  { %57 = dma.hbm_to_vmem [thread:$0]  %s50_s24, 512, %s52_s28, [#allocation6], %s1063_s1, %s1063_s1, %s1064_s16  }
  0x13   :  { %s77_s30 = sshll.u32 %s1068_s29, 4  ;;  %s101_s2 = sshll.u32 %s1208_s6, 4  ;;  %s78_s30 = int_to_ptr.vmem [resolvable:$true] %s77_s30  ;;  %s102_s2 = int_to_ptr.hbm [resolvable:$true] %s101_s2 }
  0x14   :  { %83 = dma.hbm_to_vmem [thread:$0]  %s76_s0, 512, %s78_s30, [#allocation9], %s1063_s1, %s1063_s1, %s1064_s16  }
  0x15   :  { %s114_s17 = sshll.u32 %s1209_s7, 4  ;;  %s1069_s18 = smov [#allocation13]   ;;  %s115_s17 = int_to_ptr.hbm [resolvable:$true] %s114_s17 }
  0x16   :  { %s103_s19 = sshll.u32 %s1069_s18, 4  ;;  %s1070_s3 = smov [#allocation14]   ;;  %s104_s19 = int_to_ptr.vmem [resolvable:$true] %s103_s19 }
  0x17   :  { %109 = dma.hbm_to_vmem [thread:$0]  %s102_s2, 1024, %s104_s19, [#allocation12], %s1063_s1, %s1063_s1, %s1064_s16  }
  0x18   :  { %s116_s6 = sshll.u32 %s1070_s3, 4  ;;  %s117_s6 = int_to_ptr.vmem [resolvable:$true] %s116_s6 }
  0x19   :  { %122 = dma.hbm_to_vmem [thread:$0]  %s115_s17, 1024, %s117_s6, [#allocation15], %s1063_s1, %s1063_s1, %s1064_s16  }
  0x1a   :  { %1049 = dma.done.wait [#allocation3], 128  }
  0x1b   :  { %1050 = vsyncadd [#allocation3], 4294967168 }
  0x1c   :  { %1051 = dma.done.wait [#allocation6], 640  }
  0x1d   :  { %1052 = vsyncadd [#allocation6], 4294966656 }
  0x1e   :  { %1053 = dma.done.wait [#allocation9], 1024  }
  0x1f   :  { %1054 = vsyncadd [#allocation9], 4294966272 }
  0x20   :  { %1055 = dma.done.wait [#allocation12], 2048  }
  0x21   :  { %1056 = vsyncadd [#allocation12], 4294965248 }
  0x22   :  { %1057 = dma.done.wait [#allocation15], 1024  }
  0x23   :  { %1058 = vsyncadd [#allocation15], 4294966272  ;;  %v783_v0 = vld [vmem:[#allocation11 + $0x38] sm:$0xff]  ;;  %v782_v3 = vld [vmem:[#allocation11 + $0x30] sm:$0xff]  ;;  %vm277_vm0 = vcmask 523264   ;;  %s609_s24 = sshll.u32 %s1214_s12, 4  ;;  %s610_s24 = int_to_ptr.hbm [resolvable:$true] %s609_s24 }
  0x24   :  { %v795_v1 = vld [vmem:[#allocation13 + $0x38] sm:$0xff]  ;;  %240 = vmatpush.bf16.msra.mxu0 %v783_v0  ;;  %v794_v4 = vld [vmem:[#allocation13 + $0x30] sm:$0xff]  ;;  %v781_v8 = vld [vmem:[#allocation11 + $0x28] sm:$0xff] }
  0x25   :  { %v775_v2 = vld [vmem:[#allocation7 + $0x18] sm:$0xff]  ;;  %390 = vmatpush.bf16.msra.mxu2 %v795_v1  ;;  %v774_v6 = vld [vmem:[#allocation7 + $0x10] sm:$0xff]  ;;  %v793_v9 = vld [vmem:[#allocation13 + $0x28] sm:$0xff] }
  0x26   :  { %v787_v5 = vld [vmem:[#allocation8 + $0x18] sm:$0xff]  ;;  %285 = vmatpush.bf16.msra.mxu1 %v775_v2  ;;  %v786_v7 = vld [vmem:[#allocation8 + $0x10] sm:$0xff]  ;;  %v773_v10 = vld [vmem:[#allocation7 + $0x8] sm:$0xff] }
  0x27   :  { %431 = vmatpush.bf16.msra.mxu3 %v787_v5  ;;  %v785_v11 = vld [vmem:[#allocation8 + $0x8] sm:$0xff]  ;;  %v780_v12 = vld [vmem:[#allocation11 + $0x20] sm:$0xff]  ;;  %v803_v15 = vld [vmem:[#allocation14 + $0x38] sm:$0xff] }
  0x28   :  { %241 = vmatpush.bf16.msra.mxu0 %v782_v3  ;;  %v792_v13 = vld [vmem:[#allocation13 + $0x20] sm:$0xff]  ;;  %v164_v16 = vld [vmem:[#allocation2] sm:$0xff]  ;;  %v807_v18 = vld [vmem:[#allocation10 + $0x18] sm:$0xff] }
  0x29   :  { %391 = vmatpush.bf16.msra.mxu2 %v794_v4  ;;  %v772_v14 = vld [vmem:[#allocation7] sm:$0xff]  ;;  %v779_v19 = vld [vmem:[#allocation11 + $0x18] sm:$0xff]  ;;  %v166_v21 = vpack.c.bf16 %v164_v16, %v164_v16  ;;  %v802_v22 = vld [vmem:[#allocation14 + $0x30] sm:$0xff] }
  0x2a   :  { %286 = vmatpush.bf16.msra.mxu1 %v774_v6  ;;  %v784_v17 = vld [vmem:[#allocation8] sm:$0xff]  ;;  %v791_v20 = vld [vmem:[#allocation13 + $0x18] sm:$0xff]  ;;  %v806_v23 = vld [vmem:[#allocation10 + $0x10] sm:$0xff] }
  0x2b   :  { %432 = vmatpush.bf16.msra.mxu3 %v786_v7  ;;  %v778_v24 = vld [vmem:[#allocation11 + $0x10] sm:$0xff]  ;;  %v801_v26 = vld [vmem:[#allocation14 + $0x28] sm:$0xff]  ;;  %v800_v30 = vld [vmem:[#allocation14 + $0x20] sm:$0xff] }
  0x2c   :  { %242 = vmatpush.bf16.msra.mxu0 %v781_v8  ;;  %v790_v25 = vld [vmem:[#allocation13 + $0x10] sm:$0xff]  ;;  %v805_v27 = vld [vmem:[#allocation10 + $0x8] sm:$0xff]  ;;  %v804_v31 = vld [vmem:[#allocation10] sm:$0xff] }
  0x2d   :  { %392 = vmatpush.bf16.msra.mxu2 %v793_v9  ;;  %v777_v28 = vld [vmem:[#allocation11 + $0x8] sm:$0xff]  ;;  %v776_v32 = vld [vmem:[#allocation11] sm:$0xff]  ;;  %v1181_v34 = vld [vmem:[#allocation5] sm:$0xff] }
  0x2e   :  { %287 = vmatpush.bf16.msra.mxu1 %v773_v10  ;;  %v789_v29 = vld [vmem:[#allocation13 + $0x8] sm:$0xff]  ;;  %v788_v33 = vld [vmem:[#allocation13] sm:$0xff]  ;;  %v799_v35 = vld [vmem:[#allocation14 + $0x18] sm:$0xff]  ;;  %v167_v36 = vpack.c.bf16 %v1181_v34, %v1181_v34 }
  0x2f   :  { %433 = vmatpush.bf16.msra.mxu3 %v785_v11  ;;  %v798_v37 = vld [vmem:[#allocation14 + $0x10] sm:$0xff]  ;;  %v797_v38 = vld [vmem:[#allocation14 + $0x8] sm:$0xff]  ;;  %v796_v39 = vld [vmem:[#allocation14] sm:$0xff] }
  0x30   :  { %243 = vmatpush.bf16.msra.mxu0 %v780_v12  ;;  %v819_v43 = vld [vmem:[%s1210_s8] ss:$0 sm:$0xff] }
  0x31   :  { %393 = vmatpush.bf16.msra.mxu2 %v792_v13  ;;  %v820_v49 = vld [vmem:[%s1211_s9] ss:$0 sm:$0xff] }
  0x32   :  { %288 = vmatpush.bf16.msra.mxu1 %v772_v14  ;;  %v821_v3 = vld [vmem:[%s1213_s11] ss:$0 sm:$0xff] }
  0x33   :  { %434 = vmatpush.bf16.msra.mxu3 %v784_v17  ;;  %v822_v7 = vld [vmem:[%s1212_s10] ss:$0 sm:$0xff]  ;;  %s1071_s10 = smov [#allocation16]  }
  0x34   :  { %244 = vmatpush.bf16.msra.mxu0 %v779_v19  ;;  %s607_s11 = sshll.u32 %s1071_s10, 4  ;;  %s608_s11 = int_to_ptr.vmem [resolvable:$true] %s607_s11 }
  0x35   :  { %394 = vmatpush.bf16.msra.mxu2 %v791_v20  ;;  %671 = vmatmul.msk.bf16.vlgmr.msra.gmra.mxu1 %vm277_vm0, %v166_v21 }
  0x36   :  { %532 = vmatpush.bf16.msrb.mxu1 %v803_v15  ;;  %721 = vmatmul.msk.bf16.vlgmr.msra.gmra.mxu3 %vm277_vm0, %v166_v21 }
  0x37   :  { %585 = vmatpush.bf16.msrb.mxu3 %v807_v18 }
  0x38   :  { %245 = vmatpush.bf16.msra.mxu0 %v778_v24 }
  0x39   :  { %395 = vmatpush.bf16.msra.mxu2 %v790_v25 }
  0x3a   :  { %533 = vmatpush.bf16.msrb.mxu1 %v802_v22 }
  0x3b   :  { %586 = vmatpush.bf16.msrb.mxu3 %v806_v23 }
  0x3c   :  { %246 = vmatpush.bf16.msra.mxu0 %v777_v28 }
  0x3d   :  { %396 = vmatpush.bf16.msra.mxu2 %v789_v29 }
  0x3e   :  { %534 = vmatpush.bf16.msrb.mxu1 %v801_v26 }
  0x3f   :  { %587 = vmatpush.bf16.msrb.mxu3 %v805_v27 }
  0x40   :  { %247 = vmatpush.bf16.msra.mxu0 %v776_v32 }
  0x41   :  { %397 = vmatpush.bf16.msra.mxu2 %v788_v33 }
  0x42   :  { %535 = vmatpush.bf16.msrb.mxu1 %v800_v30 }
  0x43   :  { %588 = vmatpush.bf16.msrb.mxu3 %v804_v31  ;;  %248 = vmatmul.bf16.vlgmr.msra.gmra.mxu0 %v167_v36 }
  0x44   :  { %398 = vmatmul.bf16.vlgmr.msra.gmra.mxu2 %v167_v36 }
  0x46   :  { %536 = vmatpush.bf16.msrb.mxu1 %v799_v35  ;;  %771 = vmatmul.msk.bf16.vlgmr.msrb.gmra.mxu3 %vm277_vm0, %v166_v21 }
  0x4a   :  { %537 = vmatpush.bf16.msrb.mxu1 %v798_v37 }
  0x4e   :  { %538 = vmatpush.bf16.msrb.mxu1 %v797_v38 }
  0x52   :  { %539 = vmatpush.bf16.msrb.mxu1 %v796_v39 }
  0x55   :  { %540 = vmatmul.bf16.vlgmr.msrb.gmra.mxu1 %v167_v36 }
  0xb2   :  { %v290_v40 = vpop.f32.mrf.mxu1 }
  0xb9   :  { %v436_v41 = vpop.f32.mrf.mxu3 }
  0xba   :  { %v292_v42 = vpop.f32.mrf.mxu1 }
  0xc0   :  { %v249_v44 = vpop.f32.mrf.mxu0 }
  0xc1   :  { %v438_v45 = vpop.f32.mrf.mxu3  ;;  %v291_v46 = vadd.f32 %v290_v40, %v249_v44 }
  0xc3   :  { %v298_v47 = vadd.f32 %v819_v43, %v291_v46 }
  0xc5   :  { %v672_v48 = vmul.f32 -1.442695, %v298_v47 }
  0xc7   :  { %v399_v50 = vpop.f32.mrf.mxu2  ;;  %823 = vpow2.f32 %v672_v48 }
  0xc8   :  { %v437_v51 = vadd.f32 %v436_v41, %v399_v50  ;;  %v251_v52 = vpop.f32.mrf.mxu0 }
  0xc9   :  { %v590_v53 = vpop.f32.mrf.mxu3 }
  0xca   :  { %v444_v54 = vadd.f32 %v820_v49, %v437_v51  ;;  %v591_v15 = vadd.f32 %v822_v7, %v590_v53 }
  0xcc   :  { %v722_v55 = vmul.f32 -1.442695, %v444_v54 }
  0xcd   :  { %v824_v56 = vpop.eup %823 }
  0xce   :  { %825 = vpow2.f32 %v722_v55  ;;  %v302_v57 = vadd.f32 1.0, %v824_v56 }
  0xcf   :  { %v401_v58 = vpop.f32.mrf.mxu2 }
  0xd0   :  { %827 = vrcp.f32 %v302_v57  ;;  %v314_v4 = vand.u32 2147483648, %v302_v57  ;;  %v312_v6 = vand.u32 2147483647, %v302_v57  ;;  %vm308_vm2 = vweird.f32 %v302_v57 }
  0xd1   :  { %v592_v60 = vpop.f32.mrf.mxu3 }
  0xd2   :  { %v541_v59 = vpop.f32.mrf.mxu1  ;;  %v315_v12 = vor.u32 1.1754944e-38, %v314_v4  ;;  %vm313_vm4 = vcmp.eq.f32.partialorder %v312_v6, 8.507059e+37 }
  0xd3   :  { %v542_v11 = vadd.f32 %v821_v3, %v541_v59 }
  0xd4   :  { %v826_v61 = vpop.eup %825 }
  0xd5   :  { %v448_v62 = vadd.f32 1.0, %v826_v61 }
  0xd6   :  { %v828_v63 = vpop.eup %827 }
  0xd7   :  { %829 = vrcp.f32 %v448_v62  ;;  %v304_v1 = vmul.f32 %v828_v63, %v302_v57  ;;  %vm309_vm1 = vweird.f32 %v828_v63  ;;  %v460_v19 = vand.u32 2147483648, %v448_v62 }
  0xd8   :  { %vm310_vm3 = vmor %vm308_vm2, %vm309_vm1  ;;  %v458_v20 = vand.u32 2147483647, %v448_v62  ;;  %vm454_vm6 = vweird.f32 %v448_v62 }
  0xd9   :  { %v305_v2 = vsub.f32 1.0, %v304_v1  ;;  %v461_v24 = vor.u32 1.1754944e-38, %v460_v19 }
  0xda   :  { %v543_v0 = vpop.f32.mrf.mxu1  ;;  %vm459_vm8 = vcmp.eq.f32.partialorder %v458_v20, 8.507059e+37 }
  0xdb   :  { %v306_v5 = vmul.f32 %v828_v63, %v305_v2 }
  0xdd   :  { %v830_v8 = vpop.eup %829  ;;  %v307_v10 = vadd.f32 %v828_v63, %v306_v5 }
  0xde   :  { %v450_v9 = vmul.f32 %v830_v8, %v448_v62  ;;  %vm455_vm5 = vweird.f32 %v830_v8 }
  0xdf   :  { %v311_v14 = vsel %vm310_vm3, %v828_v63, %v307_v10  ;;  %vm456_vm7 = vmor %vm454_vm6, %vm455_vm5 }
  0xe0   :  { %v451_v13 = vsub.f32 1.0, %v450_v9  ;;  %v316_v16 = vsel %vm313_vm4, %v315_v12, %v311_v14 }
  0xe1   :  { %v594_v17 = vmul.f32 %v542_v11, %v316_v16 }
  0xe2   :  { %v452_v18 = vmul.f32 %v830_v8, %v451_v13 }
  0xe3   :  { %v595_v21 = vadd.f32 %v594_v17, %v591_v15 }
  0xe4   :  { %v453_v22 = vadd.f32 %v830_v8, %v452_v18 }
  0xe5   :  { %831 = vtanh.f32 %v595_v21 }
  0xe6   :  { %v457_v23 = vsel %vm456_vm7, %v830_v8, %v453_v22 }
  0xe7   :  { %v462_v25 = vsel %vm459_vm8, %v461_v24, %v457_v23 }
  0xe8   :  { %v597_v26 = vsub.f32 1.0, %v462_v25  ;;  %v599_v29 = vmul.f32 %v462_v25, %v1181_v34 }
  0xeb   :  { %v832_v27 = vpop.eup %831 }
  0xec   :  { %v598_v28 = vmul.f32 %v832_v27, %v597_v26 }
  0xee   :  { %v600_v30 = vadd.f32 %v599_v29, %v598_v28 }
  0xf0   :  { %601 = vst [vmem:[#allocation16] sm:$0xff] %v600_v30 }
  0xf1   :  { %612 = dma.vmem_to_hbm [thread:$0]  %s608_s11, 128, %s610_s24, [#allocation4]  }
  0xf2   :  { %1059 = dma.done.wait [#allocation4], 128  }
  0xf3   :  { %1060 = vsyncadd [#allocation4], 4294967168 }
  0xf4   :  { %617 = vsyncpa [#allocation3], 1 }
  0xf5   :  { %618 = vsyncpa [#allocation6], 1 }
  0xf6   :  { %619 = vsyncpa [#allocation9], 1 }
  0xf7   :  { %620 = vsyncpa [#allocation12], 1 }
  0xf8   :  { %621 = vsyncpa [#allocation15], 1 }
  0xf9   :  { %622 = vsyncpa [#allocation4], 1 }

</bundles_post_ra>
